<compile_context>
chip_gen: v7x
topology: tpu7x:2x2x1
jax: 0.10.0
libtpu: 0.0.40
codegen_flags: <defaults>
</compile_context>

<pallas_src>
import functools

import jax
import jax.numpy as jnp
from jax.experimental import pallas as pl
from jax.experimental.pallas import tpu as pltpu


def _channel_norm_kernel(x_ref, w_ref, b_ref, o_ref, *, eps: float):
    # x_ref: (Bt, C, T)   w_ref, b_ref: (1, C, 1)   o_ref: (Bt, C, T)
    x = x_ref[...].astype(jnp.float32)
    # One-pass moments over the channel (sublane) axis; f32 accumulation.
    mean = jnp.mean(x, axis=1, keepdims=True)                  # (Bt, 1, T)
    mean_sq = jnp.mean(x * x, axis=1, keepdims=True)           # (Bt, 1, T)
    var = jnp.maximum(mean_sq - mean * mean, 0.0)              # clamp fp cancellation
    inv = jax.lax.rsqrt(var + eps)                             # (Bt, 1, T)
    w = w_ref[...].astype(jnp.float32)                         # (1, C, 1)
    b = b_ref[...].astype(jnp.float32)                         # (1, C, 1)
    o_ref[...] = ((x - mean) * inv * w + b).astype(o_ref.dtype)


def _choose_tiling(B, C, HW, itemsize, target_bytes=2 << 20, min_steps=4):
    """Pick (batch_tile, hw_tile) for (Bt, C, tile_hw) blocks.

    Aims for ~target_bytes of input per grid step (amortizes per-step overhead,
    keeps double-buffered in/out + f32 temps well inside scoped VMEM on every
    generation) while keeping the lane tile either a multiple of 128 or the full
    H*W extent, and keeping at least `min_steps` grid steps so v7x's two
    TensorCores both get work.
    """
    col_bytes = max(1, C * itemsize)

    # --- lane tile over H*W ---
    if HW * col_bytes <= target_bytes:
        tile_hw = HW                 # full extent: exempt from the 128-lane rule
    else:
        cap = max(128, (target_bytes // col_bytes) // 128 * 128)
        best = None                  # prefer a multiple-of-128 divisor (no ragged edge)
        t = 128
        while t <= min(HW, cap):
            if HW % t == 0:
                best = t
            t += 128
        # Otherwise a multiple-of-128 tile with a masked ragged edge block.
        tile_hw = best if best is not None else min(cap, pl.cdiv(HW, 128) * 128)
    n_hw = pl.cdiv(HW, tile_hw)

    # --- fold batch items into the block to amortize per-step overhead ---
    block_bytes = max(1, C * tile_hw * itemsize)
    bt = max(1, min(B, target_bytes // block_bytes))
    while bt > 1 and B % bt != 0:    # keep the batch grid axis exact (no ragged batch)
        bt -= 1

    # --- guarantee enough grid steps for megacore sharding ---
    def steps(bt_):
        return (B // bt_) * n_hw

    while bt > 1 and steps(bt) < min_steps:
        bt = max(1, bt // 2)
        while bt > 1 and B % bt != 0:
            bt -= 1
    if steps(bt) < min_steps and tile_hw == HW and HW >= 256:
        want = max(2, min_steps // max(1, B // bt))
        t = max(128, pl.cdiv(pl.cdiv(HW, want), 128) * 128)
        if t < HW:
            tile_hw = t
            n_hw = pl.cdiv(HW, tile_hw)

    return bt, tile_hw


def channel_norm(x: jax.Array, weight: jax.Array, bias: jax.Array,
                 eps: float = 1e-6) -> jax.Array:
    """LayerNorm over C of an NCHW tensor x, matching the PyTorch ChannelNorm."""
    B, C, H, W = x.shape
    HW = H * W

    # Free reshape only — no transpose or pad passes through HBM.
    x3 = x.reshape(B, C, HW)
    # Params laid out (1, C, 1): resident in VMEM, broadcast over Bt and lanes.
    w3 = weight.reshape(1, C, 1)
    b3 = bias.reshape(1, C, 1)

    bt, tile_hw = _choose_tiling(B, C, HW, x.dtype.itemsize)
    grid = (B // bt, pl.cdiv(HW, tile_hw))

    # Generation-aware VMEM headroom: 48 MiB on 128-MiB parts (v5e/v6e),
    # capped to half the physical VMEM on v7x (64 MiB per TensorCore).
    try:
        vmem_cap = pltpu.get_tpu_info().vmem_capacity_bytes
    except Exception:
        vmem_cap = 128 << 20
    vmem_limit = int(min(48 << 20, vmem_cap // 2))

    kernel = functools.partial(_channel_norm_kernel, eps=eps)

    out3 = pl.pallas_call(
        kernel,
        out_shape=jax.ShapeDtypeStruct((B, C, HW), x.dtype),
        grid_spec=pltpu.PrefetchScalarGridSpec(
            num_scalar_prefetch=0,
            grid=grid,
            in_specs=[
                pl.BlockSpec((bt, C, tile_hw), lambda i, j: (i, 0, j)),
                pl.BlockSpec((1, C, 1), lambda i, j: (0, 0, 0)),
                pl.BlockSpec((1, C, 1), lambda i, j: (0, 0, 0)),
            ],
            out_specs=pl.BlockSpec((bt, C, tile_hw), lambda i, j: (i, 0, j)),
        ),
        compiler_params=pltpu.CompilerParams(
            # Every (batch, pixel) column is independent -> both axes parallel.
            dimension_semantics=("parallel", "parallel"),
            vmem_limit_bytes=vmem_limit,
        ),
    )(x3, w3, b3)

    return out3.reshape(B, C, H, W)


def _reference_channel_norm(x, weight, bias, eps=1e-6):
    xp = jnp.transpose(x, (0, 2, 3, 1)).astype(jnp.float32)
    mean = jnp.mean(xp, axis=-1, keepdims=True)
    var = jnp.mean((xp - mean) ** 2, axis=-1, keepdims=True)
    y = (xp - mean) * jax.lax.rsqrt(var + eps) * weight + bias
    return jnp.transpose(y, (0, 3, 1, 2)).astype(x.dtype)


if __name__ == "__main__":
    key = jax.random.PRNGKey(0)
    kx, kw, kb, kx2, kw2, kb2 = jax.random.split(key, 6)

    # Primary small-shape check (lane-dense 128 tiles, batch/HW grid split).
    B, C, H, W = 2, 4, 16, 16
    x = jax.random.normal(kx, (B, C, H, W), dtype=jnp.float32)
    weight = 1.0 + 0.1 * jax.random.normal(kw, (C,), dtype=jnp.float32)
    bias = 0.1 * jax.random.normal(kb, (C,), dtype=jnp.float32)

    out = channel_norm(x, weight, bias)
    out = jax.block_until_ready(out)
    ref = _reference_channel_norm(x, weight, bias)
    assert out.shape == (B, C, H, W)
    assert jnp.allclose(out, ref, atol=1e-5, rtol=1e-5), "mismatch vs reference"

    # Secondary check: odd H*W (14*14=196, full-extent lane block) + batch folding.
    B2, C2, H2, W2 = 3, 6, 14, 14
    x2 = jax.random.normal(kx2, (B2, C2, H2, W2), dtype=jnp.float32)
    w2 = 1.0 + 0.1 * jax.random.normal(kw2, (C2,), dtype=jnp.float32)
    b2 = 0.1 * jax.random.normal(kb2, (C2,), dtype=jnp.float32)
    out2 = jax.block_until_ready(channel_norm(x2, w2, b2))
    ref2 = _reference_channel_norm(x2, w2, b2)
    assert jnp.allclose(out2, ref2, atol=1e-5, rtol=1e-5), "mismatch vs reference (odd HW)"

    print("KERNEL_OK")
</pallas_src>

<mosaic_0001>
module attributes {stable_mosaic.version = 11 : i64} {
  func.func @_channel_norm_kernel(%arg0: i32, %arg1: i32, %arg2: memref<1x4x128xf32, #tpu.memory_space<vmem>>, %arg3: memref<1x4x1xf32, #tpu.memory_space<vmem>>, %arg4: memref<1x4x1xf32, #tpu.memory_space<vmem>>, %arg5: memref<1x4x128xf32, #tpu.memory_space<vmem>>) attributes {dimension_semantics = [#tpu.dimension_semantics<parallel>, #tpu.dimension_semantics<parallel>], iteration_bounds = array<i64: 2, 2>, scalar_prefetch = 0 : i64, scratch_operands = 0 : i64, tpu.core_type = #tpu.core_type<tc>, window_params = [{transform_indices = @transform_0, window_bounds = array<i64: 1, 4, 128>}, {pipeline_mode = #tpu.pipeline_mode<synchronous>, transform_indices = @transform_1, window_bounds = array<i64: 1, 4, 1>}, {pipeline_mode = #tpu.pipeline_mode<synchronous>, transform_indices = @transform_2, window_bounds = array<i64: 1, 4, 1>}, {transform_indices = @transform_3, window_bounds = array<i64: 1, 4, 128>}]} {
    %c0 = arith.constant 0 : index
    %c0_0 = arith.constant 0 : index
    %c0_1 = arith.constant 0 : index
    %0 = vector.load %arg2[%c0, %c0_0, %c0_1] : memref<1x4x128xf32, #tpu.memory_space<vmem>>, vector<1x4x128xf32>
    %cst = arith.constant dense<0.000000e+00> : vector<1x128xf32>
    %1 = vector.multi_reduction <add>, %0, %cst [1] : vector<1x4x128xf32> to vector<1x128xf32>
    %2 = vector.shape_cast %1 : vector<1x128xf32> to vector<1x1x128xf32>
    %cst_2 = arith.constant 4.000000e+00 : f32
    %3 = vector.broadcast %cst_2 : f32 to vector<1x1x128xf32>
    %4 = arith.divf %2, %3 : vector<1x1x128xf32>
    %5 = arith.mulf %0, %0 : vector<1x4x128xf32>
    %cst_3 = arith.constant dense<0.000000e+00> : vector<1x128xf32>
    %6 = vector.multi_reduction <add>, %5, %cst_3 [1] : vector<1x4x128xf32> to vector<1x128xf32>
    %7 = vector.shape_cast %6 : vector<1x128xf32> to vector<1x1x128xf32>
    %cst_4 = arith.constant 4.000000e+00 : f32
    %8 = vector.broadcast %cst_4 : f32 to vector<1x1x128xf32>
    %9 = arith.divf %7, %8 : vector<1x1x128xf32>
    %10 = arith.mulf %4, %4 : vector<1x1x128xf32>
    %11 = arith.subf %9, %10 : vector<1x1x128xf32>
    %cst_5 = arith.constant 0.000000e+00 : f32
    %12 = vector.broadcast %cst_5 : f32 to vector<1x1x128xf32>
    %13 = arith.maximumf %11, %12 : vector<1x1x128xf32>
    %cst_6 = arith.constant 9.99999997E-7 : f32
    %14 = vector.broadcast %cst_6 : f32 to vector<1x1x128xf32>
    %15 = arith.addf %13, %14 : vector<1x1x128xf32>
    %16 = math.rsqrt %15 : vector<1x1x128xf32>
    %c0_7 = arith.constant 0 : index
    %c0_8 = arith.constant 0 : index
    %c0_9 = arith.constant 0 : index
    %17 = vector.load %arg3[%c0_7, %c0_8, %c0_9] : memref<1x4x1xf32, #tpu.memory_space<vmem>>, vector<1x4x1xf32>
    %c0_10 = arith.constant 0 : index
    %c0_11 = arith.constant 0 : index
    %c0_12 = arith.constant 0 : index
    %18 = vector.load %arg4[%c0_10, %c0_11, %c0_12] : memref<1x4x1xf32, #tpu.memory_space<vmem>>, vector<1x4x1xf32>
    %19 = vector.broadcast %4 : vector<1x1x128xf32> to vector<1x4x128xf32>
    %20 = arith.subf %0, %19 : vector<1x4x128xf32>
    %21 = vector.broadcast %16 : vector<1x1x128xf32> to vector<1x4x128xf32>
    %22 = arith.mulf %20, %21 : vector<1x4x128xf32>
    %23 = vector.broadcast %17 : vector<1x4x1xf32> to vector<1x4x128xf32>
    %24 = arith.mulf %22, %23 : vector<1x4x128xf32>
    %25 = vector.broadcast %18 : vector<1x4x1xf32> to vector<1x4x128xf32>
    %26 = arith.addf %24, %25 : vector<1x4x128xf32>
    %c0_13 = arith.constant 0 : index
    %c0_14 = arith.constant 0 : index
    %c0_15 = arith.constant 0 : index
    %27 = vector.load %arg5[%c0_13, %c0_14, %c0_15] : memref<1x4x128xf32, #tpu.memory_space<vmem>>, vector<1x4x128xf32>
    tpu.vector_store %arg5[%c0_13, %c0_14, %c0_15], %26 {strides = array<i32>} : memref<1x4x128xf32, #tpu.memory_space<vmem>>, vector<1x4x128xf32>,
    return
  }
  func.func @transform_0(%arg0: i32, %arg1: i32) -> (i32, i32, i32) {
    %c0_i32 = arith.constant 0 : i32
    %c0_i32_0 = arith.constant 0 : i32
    return %arg0, %c0_i32, %arg1 : i32, i32, i32
  }
  func.func @transform_1(%arg0: i32, %arg1: i32) -> (i32, i32, i32) {
    %c0_i32 = arith.constant 0 : i32
    %c0_i32_0 = arith.constant 0 : i32
    %c0_i32_1 = arith.constant 0 : i32
    %c0_i32_2 = arith.constant 0 : i32
    return %c0_i32, %c0_i32_0, %c0_i32_1 : i32, i32, i32
  }
  func.func @transform_2(%arg0: i32, %arg1: i32) -> (i32, i32, i32) {
    %c0_i32 = arith.constant 0 : i32
    %c0_i32_0 = arith.constant 0 : i32
    %c0_i32_1 = arith.constant 0 : i32
    %c0_i32_2 = arith.constant 0 : i32
    return %c0_i32, %c0_i32_0, %c0_i32_1 : i32, i32, i32
  }
  func.func @transform_3(%arg0: i32, %arg1: i32) -> (i32, i32, i32) {
    %c0_i32 = arith.constant 0 : i32
    %c0_i32_0 = arith.constant 0 : i32
    return %arg0, %c0_i32, %arg1 : i32, i32, i32
  }
}

</mosaic_0001>

<bundles_post_ra>
// kernel: tpu_custom_call.1
= control target key start
LH: loop header
LB: loop body
LE: loop exit
PB: predicated region body
PF: predicated region fallthrough
CT: control target
= control target key end

     0   :  { %8 = vsyncpa [#allocation3], 0  ;;  %s801_s0 = inlined_call_operand.hbm [shape: f32[2,4,256], index: 0, kind: input, shape index: {}]   ;;  %s802_s1 = inlined_call_operand.vmem [shape: f32[1,4,1], index: 1, kind: input, shape index: {}]   ;;  %s803_s2 = inlined_call_operand.vmem [shape: f32[1,4,1], index: 2, kind: input, shape index: {}]   ;;  %s804_s3 = inlined_call_operand.hbm [shape: f32[2,4,256], index: 3, kind: output, shape index: {}]  }
   0x1   :  { %10 = vsyncpa [#allocation3 + $0x1], 0 }
   0x2   :  { %11 = vsyncpa [#allocation4], 0 }
   0x3   :  { %13 = vsyncpa [#allocation4 + $0x1], 0  ;;  %s597_s12 = smov 0   ;;  %s599_s13 = smov 0  }
   0x4   :  { %s601_s14 = smov 0   ;;  %s603_s15 = smov 0  }
   0x5   :  { %s605_s16 = smov 0   ;;  %s607_s17 = smov 0  }
   0x6   :  { %s609_s18 = smov 0   ;;  %s611_s19 = smov 0  }
   0x7 LB: > { %s347_s20 = sadd.s32 4294967295, %s572_s19   ;;  %s348_s21 = sadd.s32 4294967294, %s572_s19   ;;  %s572_s19 = sphi %s611_s19, %s19_s19   ;;  %s568_s18 = sphi %s609_s18, %s821_s18   ;;  %s564_s17 = sphi %s607_s17, %s820_s17   ;;  %s560_s16 = sphi %s605_s16, %s819_s16   ;;  %s556_s15 = sphi %s603_s15, %s818_s15   ;;  %s552_s14 = sphi %s601_s14, %s817_s14   ;;  %s548_s13 = sphi %s599_s13, %s816_s13   ;;  %s544_s12 = sphi %s597_s12, %s815_s12  }
   0x8   : > { %s28_s22 = sadd.s32 1, %s564_s17  ;;  %s31_s23 = sadd.s32 1, %s568_s18 }
   0x9   : > { %p29_p0 = scmp.ge.s32.totalorder %s28_s22, 2  ;;  %s40_s24 = sadd.s32 1, %s552_s14 }
   0xa   : > { %p47_p1 = scmp.ne.s32.totalorder %s552_s14, %s548_s13  ;;  %p48_p2 = scmp.eq.s32.totalorder %s572_s19, 0 }
   0xb   : > { %s823_s22 = smov (%p29_p0, %s28_s22), 0  ;;  %s825_s23 = smov (!%p29_p0, %s31_s23), %s568_s18 }
   0xc   : > { %s36_s25 = ssub.s32 %s564_s17, %s823_s22  ;;  %p650_p3 = por %p48_p2, %p47_p1 }
   0xd   : > { %p33_p4 = scmp.ge.s32.totalorder %s825_s23, 2  ;;  %p53_p5 = scmp.ne.s32.totalorder %s548_s13, %s544_s12 }
   0xe   : > { %p54_p6 = scmp.eq.s32.totalorder %s347_s20, 0  ;;  %p121_p7 = scmp.eq.s32.totalorder %s347_s20, 3 }
   0xf   : > { %s827_s23 = smov (%p33_p4, %s825_s23), 0  ;;  %p127_p10 = scmp.eq.s32.totalorder %s348_s21, 3 }
  0x10   : > { %p658_p8 = por %p54_p6, %p53_p5  ;;  %p662_p9 = por %p121_p7, %p47_p1 }
  0x11   : > { %s35_s29 = ssub.s32 %s568_s18, %s827_s23  ;;  %p668_p12 = por %p127_p10, %p53_p5 }
  0x12   : > { %s808_s28 = scalar_select %p662_p9, 1, 0 }
  0x13   : > { %s37_s30 = sor.u32 %s36_s25, %s35_s29  ;;  %p374_p13 = scmp.lt.s32.totalorder %s572_s19, 4 }
  0x14   : > { %p38_p11 = scmp.eq.s32.totalorder %s37_s30, 0  ;;  %s153_s5 = sand.u32 1, %s552_s14  }
  0x15   : > { %s809_s4 = scalar_select %p668_p12, 1, 0 }
  0x16   : > { %s675_s6 = scalar_select %p38_p11, %s552_s14, %s40_s24  }
  0x17   : > { %s351_s7 = sshll.u32 %s153_s5, 2  ;;  %s352_s8 = sshll.u32 %s568_s18, 1 }
  0x18   : > { %s162_s9 = sadd.s32 %s564_s17, %s352_s8  ;;  %s157_s10 = scalar_lea.vmem [#allocation2], %s351_s7 }
  0x19   : > { %s166_s11 = sshll.u32 %s157_s10, 4  ;;  %s353_s20 = sshll.u32 %s162_s9, 6  ;;  %s679_s11 = int_to_ptr.vmem [resolvable:$true] %s166_s11 }
  0x1a   : > { %s684_s29 = scalar_lea.hbm %s801_s0, %s353_s20  ;;  %p688_p0 = pnand %p374_p13, %p650_p3 }
  0x1b   : > { %s154_s30 = scalar_lea.sflag [#allocation3], %s153_s5  ;;  %s444_s7 = scalar_lea.hbm %s684_s29, 64 }
  0x1c   : > { %p445_p4 = scmp.ne.s32.totalorder %s684_s29, %s444_s7  ;;  %p446_p5 = pneg %p688_p0 }
  0x1d   : > { %s449_s9 = scalar_lea.hbm %s801_s0, 256  ;;  %p450_p3 = scmp.lt.u32.totalorder %s684_s29, %s801_s0 }
  0x1e   : > { %p447_p6 = pnand %p446_p5, %p445_p4  ;;  %p451_p10 = scmp.lt.u32.totalorder %s449_s9, %s444_s7 }
  0x1f   : > { %p453_p13 = scmp.lt.u32.totalorder %s444_s7, %s684_s29 }
  0x20   : > { %p448_p7 = pneg %p447_p6  ;;  %p452_p11 = por %p451_p10, %p450_p3 }
  0x22   : > { %p454_p1 = por %p453_p13, %p452_p11 }
  0x24   : > { %p455_p2 = pnand %p454_p1, %p448_p7 }
  0x26   : > { %458 = shalt.err (!%p455_p2)
}
  0x27   : > { %s459_s5 = scalar_lea.vmem %s679_s11, 64  ;;  %s574_s21 = smov [#allocation2]  }
  0x28   : > { %p460_p4 = scmp.ne.s32.totalorder %s679_s11, %s459_s5  ;;  %s464_s25 = sshll.u32 %s574_s21, 4  ;;  %s465_s25 = int_to_ptr.vmem [resolvable:$false] %s464_s25 }
  0x29   : > { %s466_s26 = scalar_lea.vmem %s465_s25, 128  ;;  %p467_p9 = scmp.lt.s32.totalorder %s679_s11, %s465_s25 }
  0x2a   : > { %p462_p6 = pnand %p460_p4, %p446_p5  ;;  %p468_p3 = scmp.lt.s32.totalorder %s466_s26, %s459_s5 }
  0x2c   : > { %p463_p12 = pneg %p462_p6  ;;  %p469_p10 = por %p468_p3, %p467_p9 }
  0x2e   : > { %p470_p11 = pnand %p469_p10, %p463_p12 }
  0x30   : > { %473 = shalt.err (!%p470_p11)
}
  0x31   : > { %369 = dma.hbm_to_vmem [thread:$0]  (!%p688_p0), %s684_s29, 64, %s679_s11, %s154_s30  }
  0x32   : > { %p811_p1 = scmp.lt.s32.totalorder %s572_s19, 5  ;;  %p812_p2 = scmp.ge.s32.totalorder %s572_s19, 1 }
  0x34   : > { %p172_p5 = pnand %p812_p2, %p811_p1 }
  0x35   : > { %s724_s7 = sand.u32 (!%p172_p5), 1, %s548_s13  }
  0x36   : > { %175 = sbr.rel (%p172_p5) target bundleno = 212 (0xd4), region = 32  ;;  %s355_s8 = sshll.u32 (!%p172_p5), %s724_s7, 2 }
  0x37   : > { %s178_s9 = scalar_lea.sflag (!%p172_p5), [#allocation3], %s724_s7  ;;  %s181_s24 = scalar_lea.vmem (!%p172_p5), [#allocation2], %s355_s8 }
  0x3d   : > { %535 = dma.done.wait (%p658_p8), %s178_s9, 64  }
  0x3e   : > { %537 = vsyncadd (%p658_p8), %s178_s9, 4294967232  ;;  %v575_v0 = vmov 0   ;;  %v229_v1 = vld [vmem:[%s802_s1] sm:$0xf]  ;;  %vm205_vm0 = vcmask 1043456   ;;  %s358_s27 = sshll.u32 %s560_s16, 1 }
  0x3f   : > { %441 = vset.pattern.permute.xlu0 %v575_v0  ;;  %v230_v2 = vld [vmem:[%s803_s2] sm:$0xf]  ;;  %s258_s20 = sadd.s32 %s556_s15, %s358_s27  ;;  %s203_s21 = scalar_lea.vmem [#allocation5], %s355_s8 }
  0x40   : > { %235 = vperm.xlu0 %441, %v229_v1   ;;  %v204_v3 = vld [vmem:[%s181_s24] sm:$0xf]  ;;  %s359_s5 = sshll.u32 %s258_s20, 6  ;;  %s262_s25 = sshll.u32 %s203_s21, 4  ;;  %s749_s25 = int_to_ptr.vmem [resolvable:$true] %s262_s25 }
  0x41   : > { %v206_v4 = vsel %vm205_vm0, %v204_v3, 0.0  ;;  %v215_v5 = vmul.f32 %v204_v3, %v204_v3  ;;  %s747_s24 = scalar_lea.hbm %s804_s3, %s359_s5  ;;  %s247_s15 = scalar_lea.sflag [#allocation4], %s724_s7 }
  0x42   : > { %v207_v6 = vrot.slane %v206_v4, 4  ;;  %s474_s16 = scalar_lea.vmem %s749_s25, 64  ;;  %p813_p9 = scmp.ne.s32.totalorder %s808_s28, 0 }
  0x43   : > { %v216_v7 = vsel %vm205_vm0, %v215_v5, 0.0  ;;  %p475_p8 = scmp.ne.s32.totalorder %s749_s25, %s474_s16  ;;  %s576_s8 = smov [#allocation5]  }
  0x44   : > { %241 = vperm.xlu0 %441, %v230_v2   ;;  %v208_v8 = vadd.f32 %v207_v6, %v206_v4  ;;  %v217_v9 = vrot.slane %v216_v7, 4  ;;  %s478_s11 = sshll.u32 %s576_s8, 4  ;;  %s479_s11 = int_to_ptr.vmem [resolvable:$false] %s478_s11 }
  0x45   : > { %p476_p12 = pnand %p475_p8, %p813_p9  ;;  %s480_s29 = scalar_lea.vmem %s479_s11, 128 }
  0x46   : > { %v209_v10 = vrot.slane %v208_v8, 2  ;;  %v218_v11 = vadd.f32 %v217_v9, %v216_v7  ;;  %p481_p7 = scmp.lt.s32.totalorder %s749_s25, %s479_s11  ;;  %p482_p13 = scmp.lt.s32.totalorder %s480_s29, %s474_s16 }
  0x47   : > { %p477_p0 = pneg %p476_p12 }
  0x48   : > { %v210_v12 = vadd.f32 %v209_v10, %v208_v8  ;;  %v219_v13 = vrot.slane %v218_v11, 2  ;;  %p483_p4 = por %p482_p13, %p481_p7 }
  0x4a   : > { %v211_v14 = vrot.slane %v210_v12, 1  ;;  %v220_v15 = vadd.f32 %v219_v13, %v218_v11  ;;  %p484_p6 = pnand %p483_p4, %p477_p0 }
  0x4c   : > { %v212_v16 = vadd.f32 %v211_v14, %v210_v12  ;;  %v221_v17 = vrot.slane %v220_v15, 1 }
  0x4e   : > { %v214_v18 = vmul.f32 0.25, %v212_v16  ;;  %v222_v19 = vadd.f32 %v221_v17, %v220_v15 }
  0x50   : > { %v223_v20 = vmul.f32 0.25, %v222_v19  ;;  %v224_v21 = vmul.f32 %v214_v18, %v214_v18  ;;  %v231_v25 = vsub.f32 %v204_v3, %v214_v18 }
  0x52   : > { %v225_v22 = vsub.f32 %v223_v20, %v224_v21 }
  0x54   : > { %v226_v23 = vmax.f32 %v225_v22, 0.0 }
  0x56   : > { %v227_v24 = vadd.f32 1e-06, %v226_v23 }
  0x58   : > { %442 = vrsqrt.f32 %v227_v24 }
  0x62   : > { %v443_v26 = vpop.eup %442 }
  0x63   : > { %v232_v27 = vmul.f32 %v443_v26, %v231_v25 }
  0xbf   : > { %v236_v28 = vpop.permute.xlu0 %235 }
  0xc0   : > { %v238_v29 = vmul.f32 %v236_v28, %v232_v27 }
  0xc3   : > { %v242_v30 = vpop.permute.xlu0 %241 }
  0xc4   : > { %v244_v31 = vadd.f32 %v242_v30, %v238_v29 }
  0xc6   : > { %245 = vst [vmem:[%s203_s21] sm:$0xf] %v244_v31 }
  0xc7   : > { %487 = shalt.err (!%p484_p6)
}
  0xc8   : > { %s488_s7 = scalar_lea.hbm %s747_s24, 64  ;;  %s492_s27 = scalar_lea.hbm %s804_s3, 256 }
  0xc9   : > { %p489_p3 = scmp.ne.s32.totalorder %s747_s24, %s488_s7  ;;  %p493_p1 = scmp.lt.u32.totalorder %s747_s24, %s804_s3 }
  0xca   : > { %p494_p2 = scmp.lt.u32.totalorder %s492_s27, %s488_s7  ;;  %p496_p8 = scmp.lt.u32.totalorder %s488_s7, %s747_s24 }
  0xcb   : > { %p490_p10 = pnand %p489_p3, %p813_p9 }
  0xcc   : > { %p495_p5 = por %p494_p2, %p493_p1 }
  0xcd   : > { %p491_p11 = pneg %p490_p10 }
  0xce   : > { %p497_p12 = por %p496_p8, %p495_p5 }
  0xd0   : > { %p498_p0 = pnand %p497_p12, %p491_p11 }
  0xd2   : > { %501 = shalt.err (!%p498_p0)
}
  0xd3   : > { %364 = dma.vmem_to_hbm [thread:$0]  (%p813_p9), %s749_s25, 64, %s747_s24, %s247_s15  }
  0xd4 PF: > { %p375_p7 = scmp.ge.s32.totalorder %s572_s19, 2  ;;  %s274_s21 = sand.u32 1, %s544_s12  }
  0xd5   : > { %p814_p13 = scmp.ne.s32.totalorder %s809_s4, 0  ;;  %s275_s26 = scalar_lea.sflag [#allocation4], %s274_s21 }
  0xd7   : > { %p371_p4 = pnand %p375_p7, %p814_p13 }
  0xd9   : > { %539 = dma.done.wait (!%p371_p4), %s275_s26, 64  }
  0xda   : > { %541 = vsyncadd (!%p371_p4), %s275_s26, 4294967232  ;;  %s19_s19 = sadd.s32 1, %s572_s19   ;;  %s815_s12 = smov %s548_s13 }
  0xdb   : > { %p16_p6 = scmp.ge.s32.totalorder %s19_s19, 6   ;;  %s816_s13 = smov %s552_s14 }
  0xdc   : > { %s817_s14 = smov %s675_s6  ;;  %s818_s15 = smov %s564_s17 }
  0xdd   : > { %s819_s16 = smov %s568_s18  ;;  %s820_s17 = smov %s823_s22 }
  0xde   : > { %s821_s18 = smov %s827_s23  ;;  %18 = sbr.rel (!%p16_p6) target bundleno = 7 (0x7), region = 77 }
  0xe5   :  { %280 = vsyncpa [#allocation3], 1 }
  0xe6   :  { %282 = vsyncpa [#allocation3 + $0x1], 1 }
  0xe7   :  { %283 = vsyncpa [#allocation4], 1 }
  0xe8   :  { %285 = vsyncpa [#allocation4 + $0x1], 1 }

</bundles_post_ra>
